<compile_context>
chip_gen: v5e
topology: v5e:2x2
jax: 0.10.0
libtpu: 0.0.40
codegen_flags: <defaults>
</compile_context>

<pallas_src>
import functools

import jax
import jax.numpy as jnp
from jax import lax
from jax.experimental import pallas as pl
from jax.experimental.pallas import tpu as pltpu


def _round_up(v, m):
    return ((v + m - 1) // m) * m


def _tpu_vmem_capacity_bytes(default=64 << 20):
    """Physical VMEM per core; conservative v7x-sized default if the query fails."""
    try:
        info = pltpu.get_tpu_info()
        cap = int(getattr(info, "vmem_capacity_bytes", 0) or 0)
        if cap > 0:
            return cap
    except Exception:
        pass
    return default


_VMEM_CAP = _tpu_vmem_capacity_bytes()
# Headroom below physical VMEM: ~96 MiB on 128-MiB chips (v5e/v6e), ~48 MiB on v7x.
_VMEM_CEILING = (3 * _VMEM_CAP) // 4


def pad_params(w1, b1, w2, b2, *, compute_dtype=jnp.bfloat16):
    """One-time parameter prep (call once, reuse for every forward call).

    nn.Linear stores (out_features, in_features); we zero-pad to lane-dense
    multiples of 128, pre-transpose to (K, N) so the kernel runs standard
    (M,K)x(K,N) matmuls on the MXU, and cast weights to bf16 (biases stay f32).
    Padded rows/cols are zero => padded hidden units are relu(0)=0 and padded
    logits are exactly 0 (sliced off in mlp_forward)."""
    H, Din = w1.shape
    C, _ = w2.shape
    Din_p = _round_up(Din, 128)
    H_p = _round_up(H, 128)
    C_p = _round_up(C, 128)

    w1p = jnp.pad(w1, ((0, H_p - H), (0, Din_p - Din))).T.astype(compute_dtype)  # (Din_p, H_p)
    b1p = jnp.pad(b1, (0, H_p - H)).reshape(1, H_p).astype(jnp.float32)
    w2p = jnp.pad(w2, ((0, C_p - C), (0, H_p - H))).T.astype(compute_dtype)      # (H_p, C_p)
    b2p = jnp.pad(b2, (0, C_p - C)).reshape(1, C_p).astype(jnp.float32)
    return w1p, b1p, w2p, b2p


def mlp_kernel(x_ref, w1_ref, b1_ref, w2_ref, b2_ref, o_ref, acc_ref):
    k = pl.program_id(1)

    @pl.when(k == 0)
    def _init():
        acc_ref[...] = jnp.zeros_like(acc_ref)

    # fc1 partial product over this Din chunk: (TB, tk) @ (tk, H_p), f32 accumulate.
    x = x_ref[...].astype(jnp.bfloat16)  # bf16 MXU inputs, f32 accumulation
    acc_ref[...] += jnp.dot(x, w1_ref[...], preferred_element_type=jnp.float32)

    @pl.when(k == pl.num_programs(1) - 1)
    def _finalize():
        # Bias-add + ReLU in f32, then bf16 for the second MXU pass.
        h = jnp.maximum(acc_ref[...] + b1_ref[...], 0.0).astype(jnp.bfloat16)
        y = jnp.dot(h, w2_ref[...], preferred_element_type=jnp.float32)
        o_ref[...] = (y + b2_ref[...]).astype(o_ref.dtype)


@functools.partial(jax.jit, static_argnames=("n_classes", "block_b"))
def mlp_forward(x, w1p, b1p, w2p, b2p, *, n_classes, block_b=None):
    """y = relu(x @ W1^T + b1) @ W2^T + b2 using pre-padded params from pad_params().

    x: (B, Din) f32/bf16; w1p: (Din_p, H_p) bf16; b1p: (1, H_p) f32;
    w2p: (H_p, C_p) bf16; b2p: (1, C_p) f32."""
    B, Din = x.shape
    Din_p, H_p = w1p.shape
    _, C_p = w2p.shape
    assert Din <= Din_p and n_classes <= C_p

    if block_b is None:
        # Larger batch tiles on 128-MiB-VMEM chips (v5e/v6e); 512 on v7x.
        block_b = 1024 if _VMEM_CAP >= (96 << 20) else 512

    w_item = jnp.dtype(w1p.dtype).itemsize
    x_item = jnp.dtype(x.dtype).itemsize

    # ---- batch tiling: >=2 tiles whenever possible (v7x megacore), slack <= ~8 rows.
    B8 = _round_up(B, 8)
    n_b = max(pl.cdiv(B8, block_b), 2 if B8 >= 16 else 1)
    TB = _round_up(pl.cdiv(B8, n_b), 8)

    # ---- Din (reduction) tiling: only K-tile if the double-buffered resident
    # weights would blow the VMEM budget; otherwise a single K step.
    weight_budget = int(0.6 * _VMEM_CEILING)
    fixed = 2 * w_item * H_p * C_p           # w2, double-buffered
    per_col = 2 * w_item * H_p               # per Din column of w1, double-buffered
    tk = Din_p
    if fixed + per_col * tk > weight_budget:
        n_chunks = Din_p // 128
        tk = 128
        for d in range(1, n_chunks + 1):
            if n_chunks % d == 0 and fixed + per_col * (Din_p // d) <= weight_budget:
                tk = Din_p // d
                break
        # TODO(synk): if even tk=128 (or w2 alone) does not fit, additionally tile
        # H_p; not needed at this module's sizes.

    def _vmem_estimate(tb, tk_):
        return (
            2 * 2 * w_item * (tk_ * H_p + H_p * C_p)   # w1 chunk + w2, x2 buffers
            + 2 * 4 * (H_p + C_p)                      # biases, x2 buffers
            + 2 * tb * tk_ * x_item                    # x tile, x2 buffers
            + 2 * tb * C_p * 4                         # out tile, x2 buffers
            + tb * H_p * 4                             # f32 accumulator scratch
            + tb * H_p * 2 + tb * C_p * 4              # h (bf16) / y (f32) temps
        )

    # Shrink the batch tile if the total estimate still exceeds the ceiling.
    while _vmem_estimate(TB, tk) + (2 << 20) > _VMEM_CEILING and TB > 8:
        TB = _round_up(TB // 2, 8)
    n_b = pl.cdiv(B8, TB)
    B_p = n_b * TB
    n_k = Din_p // tk

    # ---- pad the activation only as much as needed.
    if (B_p, Din_p) != (B, Din):
        xp = jnp.pad(x, ((0, B_p - B), (0, Din_p - Din)))
    else:
        xp = x

    vmem_bytes = _vmem_estimate(TB, tk)
    vmem_limit = int(min(max(vmem_bytes + (2 << 20), 16 << 20), _VMEM_CEILING))

    flops = 2 * B_p * (Din_p * H_p + H_p * C_p)
    bytes_accessed = (
        B_p * Din_p * x_item
        + w_item * (Din_p * H_p + H_p * C_p)
        + 4 * (H_p + C_p)
        + B_p * C_p * 4
    )

    yp = pl.pallas_call(
        mlp_kernel,
        out_shape=jax.ShapeDtypeStruct((B_p, C_p), jnp.float32),
        grid_spec=pltpu.PrefetchScalarGridSpec(
            num_scalar_prefetch=0,
            grid=(n_b, n_k),
            in_specs=[
                pl.BlockSpec((TB, tk), lambda i, k: (i, k)),     # x tile
                pl.BlockSpec((tk, H_p), lambda i, k: (k, 0)),    # w1 chunk
                pl.BlockSpec((1, H_p), lambda i, k: (0, 0)),     # b1 (resident)
                pl.BlockSpec((H_p, C_p), lambda i, k: (0, 0)),   # w2 (resident)
                pl.BlockSpec((1, C_p), lambda i, k: (0, 0)),     # b2 (resident)
            ],
            out_specs=pl.BlockSpec((TB, C_p), lambda i, k: (i, 0)),
            scratch_shapes=[pltpu.VMEM((TB, H_p), jnp.float32)],
        ),
        compiler_params=pltpu.CompilerParams(
            dimension_semantics=("parallel", "arbitrary"),
            vmem_limit_bytes=vmem_limit),
        cost_estimate=pl.CostEstimate(
            flops=int(flops), transcendentals=0, bytes_accessed=int(bytes_accessed)),
    )(xp, w1p, b1p, w2p, b2p)

    # NOTE: for tiny C this padded-but-lane-dense store writes more logit bytes
    # than strictly needed plus a post-kernel slice; kept as the measured-better
    # default (unmasked vst), worth re-benchmarking only at very large B.
    return yp[:B, :n_classes]


def init_params(key, n_inputs, hidden_layer1, n_classes):
    """Deterministic init mirroring nn.Linear's kaiming-uniform defaults."""
    k1, k2, k3, k4 = jax.random.split(key, 4)
    bound1 = 1.0 / (n_inputs ** 0.5)
    w1 = jax.random.uniform(k1, (hidden_layer1, n_inputs), jnp.float32, -bound1, bound1)
    b1 = jax.random.uniform(k2, (hidden_layer1,), jnp.float32, -bound1, bound1)
    bound2 = 1.0 / (hidden_layer1 ** 0.5)
    w2 = jax.random.uniform(k3, (n_classes, hidden_layer1), jnp.float32, -bound2, bound2)
    b2 = jax.random.uniform(k4, (n_classes,), jnp.float32, -bound2, bound2)
    return w1, b1, w2, b2


if __name__ == "__main__":
    # Small shapes consistent with the module's forward.
    batch = 8
    n_inputs = 32
    hidden_layer1 = 32
    n_classes = 8
    # hidden_layer2 is accepted by MLP.__init__ but unused in forward().
    # TODO(synk): NewOptimizer / train_evaluate adaptive-hyperparameter logic is
    # host-side training code, not part of the forward pass.

    key = jax.random.PRNGKey(0)
    kx, kp = jax.random.split(key)
    x = jax.random.normal(kx, (batch, n_inputs), jnp.float32)
    w1, b1, w2, b2 = init_params(kp, n_inputs, hidden_layer1, n_classes)

    # One-time parameter prep (pad + transpose + bf16 cast); reused every call.
    w1p, b1p, w2p, b2p = pad_params(w1, b1, w2, b2)

    y = mlp_forward(x, w1p, b1p, w2p, b2p, n_classes=n_classes)
    y = jax.block_until_ready(y)
    assert y.shape == (batch, n_classes)

    # Reference with matching numerics (bf16 MXU inputs, f32 accumulation).
    dn = (((1,), (1,)), ((), ()))
    h_ref = jnp.maximum(
        lax.dot_general(x.astype(jnp.bfloat16), w1.astype(jnp.bfloat16), dn,
                        preferred_element_type=jnp.float32) + b1, 0.0)
    ref_bf16 = lax.dot_general(h_ref.astype(jnp.bfloat16), w2.astype(jnp.bfloat16), dn,
                               preferred_element_type=jnp.float32) + b2
    assert jnp.allclose(y, ref_bf16, atol=5e-3, rtol=5e-3)

    # Loose check against the pure-f32 PyTorch-semantics reference.
    ref_f32 = jnp.maximum(x @ w1.T + b1, 0.0) @ w2.T + b2
    assert jnp.allclose(y, ref_f32, atol=5e-2, rtol=5e-2)

    print("KERNEL_OK")
</pallas_src>

<mosaic_0001>
module attributes {stable_mosaic.version = 11 : i64} {
  func.func @mlp_kernel(%arg0: i32, %arg1: i32, %arg2: memref<8x128xf32, #tpu.memory_space<vmem>>, %arg3: memref<128x128xbf16, #tpu.memory_space<vmem>>, %arg4: memref<1x128xf32, #tpu.memory_space<vmem>>, %arg5: memref<128x128xbf16, #tpu.memory_space<vmem>>, %arg6: memref<1x128xf32, #tpu.memory_space<vmem>>, %arg7: memref<8x128xf32, #tpu.memory_space<vmem>>, %arg8: memref<8x128xf32, #tpu.memory_space<vmem>>) attributes {dimension_semantics = [#tpu.dimension_semantics<parallel>, #tpu.dimension_semantics<arbitrary>], iteration_bounds = array<i64: 1, 1>, scalar_prefetch = 0 : i64, scratch_operands = 1 : i64, tpu.core_type = #tpu.core_type<tc>, window_params = [{transform_indices = @transform_0, window_bounds = array<i64: 8, 128>}, {transform_indices = @transform_1, window_bounds = array<i64: 128, 128>}, {pipeline_mode = #tpu.pipeline_mode<synchronous>, transform_indices = @transform_2, window_bounds = array<i64: 1, 128>}, {pipeline_mode = #tpu.pipeline_mode<synchronous>, transform_indices = @transform_3, window_bounds = array<i64: 128, 128>}, {pipeline_mode = #tpu.pipeline_mode<synchronous>, transform_indices = @transform_4, window_bounds = array<i64: 1, 128>}, {transform_indices = @transform_5, window_bounds = array<i64: 8, 128>}]} {
    %c0_i32 = arith.constant 0 : i32
    %0 = arith.cmpi eq, %arg1, %c0_i32 : i32
    %1 = arith.extui %0 : i1 to i32
    %c0_i32_0 = arith.constant 0 : i32
    %2 = arith.cmpi ne, %1, %c0_i32_0 : i32
    scf.if %2 {
      %cst_10 = arith.constant 0.000000e+00 : f32
      %13 = vector.broadcast %cst_10 : f32 to vector<8x128xf32>
      %c0_11 = arith.constant 0 : index
      %c0_12 = arith.constant 0 : index
      %14 = vector.load %arg8[%c0_11, %c0_12] : memref<8x128xf32, #tpu.memory_space<vmem>>, vector<8x128xf32>
      tpu.vector_store %arg8[%c0_11, %c0_12], %13 {strides = array<i32>} : memref<8x128xf32, #tpu.memory_space<vmem>>, vector<8x128xf32>,
    } else {
    }
    %c0 = arith.constant 0 : index
    %c0_1 = arith.constant 0 : index
    %3 = vector.load %arg2[%c0, %c0_1] : memref<8x128xf32, #tpu.memory_space<vmem>>, vector<8x128xf32>
    %4 = arith.truncf %3 : vector<8x128xf32> to vector<8x128xbf16>
    %c0_2 = arith.constant 0 : index
    %c0_3 = arith.constant 0 : index
    %5 = vector.load %arg8[%c0_2, %c0_3] : memref<8x128xf32, #tpu.memory_space<vmem>>, vector<8x128xf32>
    %c0_4 = arith.constant 0 : index
    %c0_5 = arith.constant 0 : index
    %6 = vector.load %arg3[%c0_4, %c0_5] : memref<128x128xbf16, #tpu.memory_space<vmem>>, vector<128x128xbf16>
    %cst = arith.constant dense<0.000000e+00> : vector<8x128xf32>
    %7 = tpu.matmul %4, %6, %cst {dimension_numbers = #tpu.dot_dimension_numbers<[1], [0], [0], [1], [0, 0, 1, 1], [], []>} : vector<8x128xbf16>, vector<128x128xbf16>, vector<8x128xf32> -> vector<8x128xf32>
    %8 = arith.addf %5, %7 : vector<8x128xf32>
    %c0_6 = arith.constant 0 : index
    %c0_7 = arith.constant 0 : index
    %9 = vector.load %arg8[%c0_6, %c0_7] : memref<8x128xf32, #tpu.memory_space<vmem>>, vector<8x128xf32>
    tpu.vector_store %arg8[%c0_6, %c0_7], %8 {strides = array<i32>} : memref<8x128xf32, #tpu.memory_space<vmem>>, vector<8x128xf32>,
    %c0_i32_8 = arith.constant 0 : i32
    %10 = arith.cmpi eq, %arg1, %c0_i32_8 : i32
    %11 = arith.extui %10 : i1 to i32
    %c0_i32_9 = arith.constant 0 : i32
    %12 = arith.cmpi ne, %11, %c0_i32_9 : i32
    scf.if %12 {
      %c0_10 = arith.constant 0 : index
      %c0_11 = arith.constant 0 : index
      %13 = vector.load %arg8[%c0_10, %c0_11] : memref<8x128xf32, #tpu.memory_space<vmem>>, vector<8x128xf32>
      %c0_12 = arith.constant 0 : index
      %c0_13 = arith.constant 0 : index
      %14 = vector.load %arg4[%c0_12, %c0_13] : memref<1x128xf32, #tpu.memory_space<vmem>>, vector<1x128xf32>
      %15 = vector.broadcast %14 : vector<1x128xf32> to vector<8x128xf32>
      %16 = arith.addf %13, %15 : vector<8x128xf32>
      %cst_14 = arith.constant 0.000000e+00 : f32
      %17 = vector.broadcast %cst_14 : f32 to vector<8x128xf32>
      %18 = arith.maximumf %16, %17 : vector<8x128xf32>
      %19 = arith.truncf %18 : vector<8x128xf32> to vector<8x128xbf16>
      %c0_15 = arith.constant 0 : index
      %c0_16 = arith.constant 0 : index
      %20 = vector.load %arg5[%c0_15, %c0_16] : memref<128x128xbf16, #tpu.memory_space<vmem>>, vector<128x128xbf16>
      %cst_17 = arith.constant dense<0.000000e+00> : vector<8x128xf32>
      %21 = tpu.matmul %19, %20, %cst_17 {dimension_numbers = #tpu.dot_dimension_numbers<[1], [0], [0], [1], [0, 0, 1, 1], [], []>} : vector<8x128xbf16>, vector<128x128xbf16>, vector<8x128xf32> -> vector<8x128xf32>
      %c0_18 = arith.constant 0 : index
      %c0_19 = arith.constant 0 : index
      %22 = vector.load %arg6[%c0_18, %c0_19] : memref<1x128xf32, #tpu.memory_space<vmem>>, vector<1x128xf32>
      %23 = vector.broadcast %22 : vector<1x128xf32> to vector<8x128xf32>
      %24 = arith.addf %21, %23 : vector<8x128xf32>
      %c0_20 = arith.constant 0 : index
      %c0_21 = arith.constant 0 : index
      %25 = vector.load %arg7[%c0_20, %c0_21] : memref<8x128xf32, #tpu.memory_space<vmem>>, vector<8x128xf32>
      tpu.vector_store %arg7[%c0_20, %c0_21], %24 {strides = array<i32>} : memref<8x128xf32, #tpu.memory_space<vmem>>, vector<8x128xf32>,
    } else {
    }
    return
  }
  func.func @transform_0(%arg0: i32, %arg1: i32) -> (i32, i32) {
    %c0_i32 = arith.constant 0 : i32
    return %arg0, %arg1 : i32, i32
  }
  func.func @transform_1(%arg0: i32, %arg1: i32) -> (i32, i32) {
    %c0_i32 = arith.constant 0 : i32
    %c0_i32_0 = arith.constant 0 : i32
    return %arg1, %c0_i32 : i32, i32
  }
  func.func @transform_2(%arg0: i32, %arg1: i32) -> (i32, i32) {
    %c0_i32 = arith.constant 0 : i32
    %c0_i32_0 = arith.constant 0 : i32
    %c0_i32_1 = arith.constant 0 : i32
    return %c0_i32, %c0_i32_0 : i32, i32
  }
  func.func @transform_3(%arg0: i32, %arg1: i32) -> (i32, i32) {
    %c0_i32 = arith.constant 0 : i32
    %c0_i32_0 = arith.constant 0 : i32
    %c0_i32_1 = arith.constant 0 : i32
    return %c0_i32, %c0_i32_0 : i32, i32
  }
  func.func @transform_4(%arg0: i32, %arg1: i32) -> (i32, i32) {
    %c0_i32 = arith.constant 0 : i32
    %c0_i32_0 = arith.constant 0 : i32
    %c0_i32_1 = arith.constant 0 : i32
    return %c0_i32, %c0_i32_0 : i32, i32
  }
  func.func @transform_5(%arg0: i32, %arg1: i32) -> (i32, i32) {
    %c0_i32 = arith.constant 0 : i32
    %c0_i32_0 = arith.constant 0 : i32
    return %arg0, %c0_i32 : i32, i32
  }
}

</mosaic_0001>

<bundles_post_ra>
// kernel: mlp_forward.1
= control target key start
LH: loop header
LB: loop body
LE: loop exit
PB: predicated region body
PF: predicated region fallthrough
CT: control target
= control target key end

     0   :  { %10 = vsyncpa [#allocation4], 0  ;;  %s469_s0 = inlined_call_operand.vmem [shape: f32[8,128], index: 0, kind: input, shape index: {}]   ;;  %s470_s1 = inlined_call_operand.hbm [shape: bf16[128,128], index: 1, kind: input, shape index: {}]   ;;  %s471_s2 = inlined_call_operand.vmem [shape: f32[1,128], index: 2, kind: input, shape index: {}]   ;;  %s472_s3 = inlined_call_operand.hbm [shape: bf16[128,128], index: 3, kind: input, shape index: {}]   ;;  %s473_s4 = inlined_call_operand.vmem [shape: f32[1,128], index: 4, kind: input, shape index: {}]   ;;  %s474_s5 = inlined_call_operand.hbm [shape: f32[8,128], index: 5, kind: output, shape index: {}]  }
   0x1   :  { %11 = vsyncpa [#allocation7], 0 }
   0x2   :  { %12 = vsyncpa [#allocation5], 0  ;;  %s19_s20 = sshll.u32 %s470_s1, 4  ;;  %s416_s21 = smov [#allocation3]   ;;  %s20_s20 = int_to_ptr.hbm [resolvable:$true] %s19_s20 }
   0x3   :  { %s21_s22 = sshll.u32 %s416_s21, 4  ;;  %s34_s25 = sshll.u32 %s472_s3, 4  ;;  %s22_s22 = int_to_ptr.vmem [resolvable:$true] %s21_s22  ;;  %s35_s25 = int_to_ptr.hbm [resolvable:$true] %s34_s25 }
   0x4   :  { %s417_s26 = smov 64   ;;  %s418_s27 = smov 4  }
   0x5   :  { %27 = dma.hbm_to_vmem [thread:$0]  %s20_s20, 1024, %s22_s22, [#allocation4], %s417_s26, %s417_s26, %s418_s27  }
   0x6   :  { %s419_s28 = smov [#allocation6]  }
   0x7   :  { %s36_s29 = sshll.u32 %s419_s28, 4  ;;  %s37_s29 = int_to_ptr.vmem [resolvable:$true] %s36_s29 }
   0x8   :  { %42 = dma.hbm_to_vmem [thread:$0]  %s35_s25, 1024, %s37_s29, [#allocation7], %s417_s26, %s417_s26, %s418_s27  }
   0x9   :  { %410 = dma.done.wait [#allocation4], 1024  }
   0xa   :  { %411 = vsyncadd [#allocation4], 4294966272 }
   0xb   :  { %412 = dma.done.wait [#allocation7], 1024  }
   0xc   :  { %413 = vsyncadd [#allocation7], 4294966272  ;;  %v322_v0 = vld [vmem:[#allocation3 + $0x38] sm:$0xff]  ;;  %v321_v1 = vld [vmem:[#allocation3 + $0x30] sm:$0xff]  ;;  %s240_s12 = sshll.u32 %s474_s5, 4  ;;  %s241_s12 = int_to_ptr.hbm [resolvable:$true] %s240_s12 }
   0xd   :  { %125 = vmatpush.bf16.msra.mxu0 %v322_v0  ;;  %v330_v2 = vld [vmem:[#allocation6 + $0x38] sm:$0xff]  ;;  %v329_v3 = vld [vmem:[#allocation6 + $0x30] sm:$0xff]  ;;  %v320_v4 = vld [vmem:[#allocation3 + $0x28] sm:$0xff] }
   0xe   :  { %219 = vmatpush.bf16.msra.mxu1 %v330_v2  ;;  %v328_v5 = vld [vmem:[#allocation6 + $0x28] sm:$0xff]  ;;  %v319_v6 = vld [vmem:[#allocation3 + $0x20] sm:$0xff]  ;;  %v318_v8 = vld [vmem:[#allocation3 + $0x18] sm:$0xff] }
   0xf   :  { %v327_v7 = vld [vmem:[#allocation6 + $0x20] sm:$0xff]  ;;  %v326_v9 = vld [vmem:[#allocation6 + $0x18] sm:$0xff]  ;;  %v317_v10 = vld [vmem:[#allocation3 + $0x10] sm:$0xff] }
  0x10   :  { %v325_v11 = vld [vmem:[#allocation6 + $0x10] sm:$0xff]  ;;  %v316_v12 = vld [vmem:[#allocation3 + $0x8] sm:$0xff]  ;;  %v315_v13 = vld [vmem:[#allocation3] sm:$0xff] }
  0x11   :  { %126 = vmatpush.bf16.msra.mxu0 %v321_v1  ;;  %v58_v14 = vld [vmem:[%s469_s0] sm:$0xff]  ;;  %v324_v16 = vld [vmem:[#allocation6 + $0x8] sm:$0xff]  ;;  %s420_s0 = smov [#allocation8]  }
  0x12   :  { %220 = vmatpush.bf16.msra.mxu1 %v329_v3  ;;  %v59_v15 = vpack.c.bf16 %v58_v14, %v58_v14  ;;  %v323_v17 = vld [vmem:[#allocation6] sm:$0xff]  ;;  %s238_s9 = sshll.u32 %s420_s0, 4  ;;  %s239_s9 = int_to_ptr.vmem [resolvable:$true] %s238_s9 }
  0x13   :  { %v336_v18 = vld [vmem:[%s471_s2] ss:$0 sm:$0xff] }
  0x14   :  { %v337_v24 = vld [vmem:[%s473_s4] ss:$0 sm:$0xff] }
  0x15   :  { %127 = vmatpush.bf16.msra.mxu0 %v320_v4 }
  0x16   :  { %221 = vmatpush.bf16.msra.mxu1 %v328_v5 }
  0x19   :  { %128 = vmatpush.bf16.msra.mxu0 %v319_v6 }
  0x1a   :  { %222 = vmatpush.bf16.msra.mxu1 %v327_v7 }
  0x1d   :  { %129 = vmatpush.bf16.msra.mxu0 %v318_v8 }
  0x1e   :  { %223 = vmatpush.bf16.msra.mxu1 %v326_v9 }
  0x21   :  { %130 = vmatpush.bf16.msra.mxu0 %v317_v10 }
  0x22   :  { %224 = vmatpush.bf16.msra.mxu1 %v325_v11 }
  0x25   :  { %131 = vmatpush.bf16.msra.mxu0 %v316_v12 }
  0x26   :  { %225 = vmatpush.bf16.msra.mxu1 %v324_v16 }
  0x29   :  { %132 = vmatpush.bf16.msra.mxu0 %v315_v13 }
  0x2a   :  { %226 = vmatpush.bf16.msra.mxu1 %v323_v17 }
  0x2c   :  { %133 = vmatmul.bf16.vlgmr.msra.gmra.mxu0 %v59_v15 }
  0xa9   :  { %v134_v19 = vpop.f32.mrf.mxu0 }
  0xaa   :  { %v148_v20 = vadd.f32 %v336_v18, %v134_v19 }
  0xac   :  { %v149_v21 = vmax.f32 %v148_v20, 0.0 }
  0xae   :  { %v150_v22 = vpack.c.bf16 %v149_v21, %v149_v21 }
  0xb0   :  { %227 = vmatmul.bf16.vlgmr.msra.gmra.mxu1 %v150_v22 }
  0xb1   :  { %v136_v23 = vpop.f32.mrf.mxu0 }
 0x12d   :  { %v228_v25 = vpop.f32.mrf.mxu1 }
 0x12e   :  { %v229_v26 = vadd.f32 %v337_v24, %v228_v25 }
 0x130   :  { %232 = vst [vmem:[#allocation8] sm:$0xff] %v229_v26 }
 0x131   :  { %243 = dma.vmem_to_hbm [thread:$0]  %s239_s9, 128, %s241_s12, [#allocation5]  }
 0x135   :  { %v230_v27 = vpop.f32.mrf.mxu1 }
 0x136   :  { %414 = dma.done.wait [#allocation5], 128  }
 0x137   :  { %415 = vsyncadd [#allocation5], 4294967168 }
 0x138   :  { %248 = vsyncpa [#allocation4], 1 }
 0x139   :  { %249 = vsyncpa [#allocation7], 1 }
 0x13a   :  { %250 = vsyncpa [#allocation5], 1 }

</bundles_post_ra>
